<compile_context>
chip_gen: v6e
topology: v6e:2x2x1
jax: 0.10.0
libtpu: 0.0.40
codegen_flags: <defaults>
</compile_context>

<pallas_src>
import functools

import jax
import jax.numpy as jnp
import numpy as np
from jax import lax
from jax.experimental import pallas as pl
from jax.experimental.pallas import tpu as pltpu

EPS = 1e-5


# ----------------------------------------------------------------- kernel ---

def _conv_k3(h, w_ref):
    """k=3 / pad=1 conv as three accumulated MXU taps -> f32 (Co, Lp).

    h:     (C, Lp) activation already cast to the matmul dtype.
    w_ref: (3, Co, C) weights, w_ref[k] == torch_w[:, :, k].
    """
    zero_col = jnp.zeros((h.shape[0], 1), h.dtype)
    left = jnp.concatenate([zero_col, h[:, :-1]], axis=1)    # h[:, l-1], 0 at l=0
    right = jnp.concatenate([h[:, 1:], zero_col], axis=1)    # h[:, l+1], 0 at l=Lp-1
    # TODO(synk): for large, lane-aligned Lp the shifts should use pltpu.roll
    # + boundary mask (XLU slot) instead of the 1-column lane concat.
    y = jnp.dot(w_ref[0], left, preferred_element_type=jnp.float32)
    y = y + jnp.dot(w_ref[1], h, preferred_element_type=jnp.float32)
    y = y + jnp.dot(w_ref[2], right, preferred_element_type=jnp.float32)
    return y


def fused_down_block_kernel(x_ref, w1_ref, w2_ref, g1_ref, b1_ref, g2_ref,
                            b2_ref, o_ref, *, matmul_dtype):
    n_batch, _, length = x_ref.shape
    lp = length // 2
    count = float(n_batch * lp)

    # MaxPool1d(2,2): pairwise max; the stride-2 lane compaction is expressed
    # as two 0/1 selection matmuls (robust lowering, no strided lane access).
    row = lax.broadcasted_iota(jnp.int32, (length, lp), 0)
    col = lax.broadcasted_iota(jnp.int32, (length, lp), 1)
    sel_even = (row == 2 * col).astype(jnp.float32)
    sel_odd = (row == 2 * col + 1).astype(jnp.float32)

    # ---- pool + conv1 (batch loop statically unrolled; everything in VMEM) --
    y1 = []
    for n in range(n_batch):
        xb = x_ref[n]
        if xb.dtype != jnp.float32:
            xb = xb.astype(jnp.float32)
        pooled = jnp.maximum(
            jnp.dot(xb, sel_even, preferred_element_type=jnp.float32),
            jnp.dot(xb, sel_odd, preferred_element_type=jnp.float32))
        y1.append(_conv_k3(pooled.astype(matmul_dtype), w1_ref))

    # ---- BN1 (two-pass batch stats, folded to scale/shift) + ReLU + conv2 ---
    mean1 = sum(jnp.sum(y, axis=1, keepdims=True) for y in y1) / count
    var1 = sum(jnp.sum((y - mean1) ** 2, axis=1, keepdims=True) for y in y1) / count
    scale1 = g1_ref[...] * lax.rsqrt(var1 + EPS)
    shift1 = b1_ref[...] - mean1 * scale1

    y2 = []
    for n in range(n_batch):
        h = jnp.maximum(y1[n] * scale1 + shift1, 0.0)
        y2.append(_conv_k3(h.astype(matmul_dtype), w2_ref))

    # ---- BN2 + ReLU + store --------------------------------------------------
    mean2 = sum(jnp.sum(y, axis=1, keepdims=True) for y in y2) / count
    var2 = sum(jnp.sum((y - mean2) ** 2, axis=1, keepdims=True) for y in y2) / count
    scale2 = g2_ref[...] * lax.rsqrt(var2 + EPS)
    shift2 = b2_ref[...] - mean2 * scale2

    for n in range(n_batch):
        o_ref[n] = jnp.maximum(y2[n] * scale2 + shift2, 0.0).astype(o_ref.dtype)


# ---------------------------------------------------------------- wrapper ---

def down_block_1d(x_ncl, w1, g1, b1, w2, g2, b2, *, matmul_dtype=jnp.float32):
    """DownBlock1D forward.

    x_ncl: (N, Cin, L)      PyTorch NCL layout
    w1:    (Cout, Cin, 3)   torch Conv1d weight layout
    w2:    (Cout, Cout, 3)
    g*/b*: (Cout,)          BatchNorm1d weight / bias
    returns (N, Cout, L // 2) in NCL layout (float32).
    """
    N, Cin, L = x_ncl.shape
    Cout = w1.shape[0]
    Lp = L // 2

    # TODO(synk): this fully-fused single-call path assumes the whole batch fits
    # in VMEM (true for the tested sizes).  For large N*C*L the BatchNorm
    # batch-stat barrier forces a gridded multi-stage pipeline (L-tiling,
    # per-core stat partials, 'parallel' axes for v7x megacore) instead.
    approx_vmem = 4 * (N * Cin * L + 4 * N * Cout * Lp) + 4 * 6 * Cout * max(Cin, Cout)
    assert approx_vmem < 8 * 1024 * 1024, "fused path assumes a small working set"

    # torch (Co, Ci, K) -> (K, Co, Ci): w_k[k] is the (Co, Ci) tap-k matrix.
    w1_k = jnp.transpose(w1, (2, 0, 1)).astype(matmul_dtype)
    w2_k = jnp.transpose(w2, (2, 0, 1)).astype(matmul_dtype)
    g1c = g1.reshape(Cout, 1).astype(jnp.float32)
    b1c = b1.reshape(Cout, 1).astype(jnp.float32)
    g2c = g2.reshape(Cout, 1).astype(jnp.float32)
    b2c = b2.reshape(Cout, 1).astype(jnp.float32)

    kernel = functools.partial(fused_down_block_kernel, matmul_dtype=matmul_dtype)
    return pl.pallas_call(
        kernel,
        out_shape=jax.ShapeDtypeStruct((N, Cout, Lp), jnp.float32),
        compiler_params=pltpu.CompilerParams(vmem_limit_bytes=32 * 1024 * 1024),
    )(x_ncl, w1_k, w2_k, g1c, b1c, g2c, b2c)


# -------------------------------------------------------------- reference ---

def reference(x_ncl, w1, g1, b1, w2, g2, b2):
    """Pure-JAX (f32) reference matching PyTorch training-mode forward."""
    N, Cin, L = x_ncl.shape
    Lp = L // 2
    xp = jnp.max(x_ncl[:, :, :2 * Lp].reshape(N, Cin, Lp, 2), axis=-1)   # MaxPool1d(2,2)

    def conv1d(x, w):                                   # w: (Co, Ci, 3) torch layout
        return lax.conv_general_dilated(
            x, w, window_strides=(1,), padding=((1, 1),),
            dimension_numbers=('NCH', 'OIH', 'NCH'))

    def bn_relu(h, g, b):
        m = jnp.mean(h, axis=(0, 2), keepdims=True)
        v = jnp.mean((h - m) ** 2, axis=(0, 2), keepdims=True)
        y = (h - m) * lax.rsqrt(v + EPS) * g[None, :, None] + b[None, :, None]
        return jnp.maximum(y, 0.0)

    h = bn_relu(conv1d(xp, w1), g1, b1)
    h = bn_relu(conv1d(h, w2), g2, b2)
    return h


if __name__ == "__main__":
    N, Cin, Cout, L = 2, 4, 8, 16

    key = jax.random.PRNGKey(0)
    kx, kw1, kw2, kg1, kb1, kg2, kb2 = jax.random.split(key, 7)

    x = jax.random.normal(kx, (N, Cin, L), dtype=jnp.float32)               # NCL like PyTorch
    w1 = 0.3 * jax.random.normal(kw1, (Cout, Cin, 3), dtype=jnp.float32)    # torch Conv1d layout
    w2 = 0.3 * jax.random.normal(kw2, (Cout, Cout, 3), dtype=jnp.float32)
    g1 = 1.0 + 0.1 * jax.random.normal(kg1, (Cout,), dtype=jnp.float32)
    b1 = 0.1 * jax.random.normal(kb1, (Cout,), dtype=jnp.float32)
    g2 = 1.0 + 0.1 * jax.random.normal(kg2, (Cout,), dtype=jnp.float32)
    b2 = 0.1 * jax.random.normal(kb2, (Cout,), dtype=jnp.float32)

    ref = jax.block_until_ready(reference(x, w1, g1, b1, w2, g2, b2))

    # f32 MXU-input path: tight check against the f32 reference.
    fwd_f32 = jax.jit(functools.partial(down_block_1d, matmul_dtype=jnp.float32))
    out = jax.block_until_ready(fwd_f32(x, w1, g1, b1, w2, g2, b2))
    assert out.shape == (N, Cout, L // 2), out.shape
    np.testing.assert_allclose(np.asarray(out), np.asarray(ref), atol=1e-4, rtol=1e-4)

    # bf16 MXU-input path (f32 accumulation, f32 pool/BN/ReLU math): looser
    # tolerance from bf16 rounding of the conv inputs/weights.
    fwd_bf16 = jax.jit(functools.partial(down_block_1d, matmul_dtype=jnp.bfloat16))
    out_bf16 = jax.block_until_ready(fwd_bf16(x, w1, g1, b1, w2, g2, b2))
    assert out_bf16.shape == (N, Cout, L // 2), out_bf16.shape
    np.testing.assert_allclose(np.asarray(out_bf16), np.asarray(ref), atol=5e-2, rtol=5e-2)

    print("KERNEL_OK")
</pallas_src>

<mosaic_0001>
module attributes {stable_mosaic.version = 11 : i64} {
  func.func @fused_down_block_kernel(%arg0: memref<2x4x16xf32, #tpu.memory_space<vmem>>, %arg1: memref<3x8x4xf32, #tpu.memory_space<vmem>>, %arg2: memref<3x8x8xf32, #tpu.memory_space<vmem>>, %arg3: memref<8x1xf32, #tpu.memory_space<vmem>>, %arg4: memref<8x1xf32, #tpu.memory_space<vmem>>, %arg5: memref<8x1xf32, #tpu.memory_space<vmem>>, %arg6: memref<8x1xf32, #tpu.memory_space<vmem>>, %arg7: memref<2x8x8xf32, #tpu.memory_space<vmem>>) attributes {dimension_semantics = [], scalar_prefetch = 0 : i64, scratch_operands = 0 : i64, tpu.core_type = #tpu.core_type<tc>} {
    %0 = tpu.iota {dimensions = array<i32: 0>} : vector<16x8xi32>
    %1 = tpu.iota {dimensions = array<i32: 1>} : vector<16x8xi32>
    %c2_i32 = arith.constant 2 : i32
    %2 = vector.broadcast %c2_i32 : i32 to vector<16x8xi32>
    %3 = arith.muli %2, %1 : vector<16x8xi32>
    %4 = arith.cmpi eq, %0, %3 : vector<16x8xi32>
    %5 = arith.extui %4 : vector<16x8xi1> to vector<16x8xi32>
    %6 = arith.sitofp %5 : vector<16x8xi32> to vector<16x8xf32>
    %c2_i32_0 = arith.constant 2 : i32
    %7 = vector.broadcast %c2_i32_0 : i32 to vector<16x8xi32>
    %8 = arith.muli %7, %1 : vector<16x8xi32>
    %c1_i32 = arith.constant 1 : i32
    %9 = vector.broadcast %c1_i32 : i32 to vector<16x8xi32>
    %10 = arith.addi %8, %9 : vector<16x8xi32>
    %11 = arith.cmpi eq, %0, %10 : vector<16x8xi32>
    %12 = arith.extui %11 : vector<16x8xi1> to vector<16x8xi32>
    %13 = arith.sitofp %12 : vector<16x8xi32> to vector<16x8xf32>
    %c0 = arith.constant 0 : index
    %c0_1 = arith.constant 0 : index
    %c0_2 = arith.constant 0 : index
    %14 = vector.load %arg0[%c0, %c0_1, %c0_2] : memref<2x4x16xf32, #tpu.memory_space<vmem>>, vector<1x4x16xf32>
    %15 = vector.shape_cast %14 : vector<1x4x16xf32> to vector<4x16xf32>
    %cst = arith.constant dense<0.000000e+00> : vector<4x8xf32>
    %16 = tpu.matmul %15, %6, %cst {dimension_numbers = #tpu.dot_dimension_numbers<[1], [0], [0], [1], [0, 0, 1, 1], [], []>} : vector<4x16xf32>, vector<16x8xf32>, vector<4x8xf32> -> vector<4x8xf32>
    %cst_3 = arith.constant dense<0.000000e+00> : vector<4x8xf32>
    %17 = tpu.matmul %15, %13, %cst_3 {dimension_numbers = #tpu.dot_dimension_numbers<[1], [0], [0], [1], [0, 0, 1, 1], [], []>} : vector<4x16xf32>, vector<16x8xf32>, vector<4x8xf32> -> vector<4x8xf32>
    %18 = arith.maximumf %16, %17 : vector<4x8xf32>
    %cst_4 = arith.constant 0.000000e+00 : f32
    %19 = vector.broadcast %cst_4 : f32 to vector<4x1xf32>
    %20 = vector.extract_strided_slice %18 {offsets = [0, 0], sizes = [4, 7], strides = [1, 1]} : vector<4x8xf32> to vector<4x7xf32>
    %21 = tpu.concatenate %19, %20 in 1 : vector<4x1xf32>, vector<4x7xf32> -> vector<4x8xf32>
    %22 = vector.extract_strided_slice %18 {offsets = [0, 1], sizes = [4, 7], strides = [1, 1]} : vector<4x8xf32> to vector<4x7xf32>
    %23 = tpu.concatenate %22, %19 in 1 : vector<4x7xf32>, vector<4x1xf32> -> vector<4x8xf32>
    %c0_5 = arith.constant 0 : index
    %c0_6 = arith.constant 0 : index
    %c0_7 = arith.constant 0 : index
    %24 = vector.load %arg1[%c0_5, %c0_6, %c0_7] : memref<3x8x4xf32, #tpu.memory_space<vmem>>, vector<1x8x4xf32>
    %25 = vector.shape_cast %24 : vector<1x8x4xf32> to vector<8x4xf32>
    %cst_8 = arith.constant dense<0.000000e+00> : vector<8x8xf32>
    %26 = tpu.matmul %25, %21, %cst_8 {dimension_numbers = #tpu.dot_dimension_numbers<[1], [0], [0], [1], [0, 0, 1, 1], [], []>} : vector<8x4xf32>, vector<4x8xf32>, vector<8x8xf32> -> vector<8x8xf32>
    %c1 = arith.constant 1 : index
    %c0_9 = arith.constant 0 : index
    %c0_10 = arith.constant 0 : index
    %27 = vector.load %arg1[%c1, %c0_9, %c0_10] : memref<3x8x4xf32, #tpu.memory_space<vmem>>, vector<1x8x4xf32>
    %28 = vector.shape_cast %27 : vector<1x8x4xf32> to vector<8x4xf32>
    %cst_11 = arith.constant dense<0.000000e+00> : vector<8x8xf32>
    %29 = tpu.matmul %28, %18, %cst_11 {dimension_numbers = #tpu.dot_dimension_numbers<[1], [0], [0], [1], [0, 0, 1, 1], [], []>} : vector<8x4xf32>, vector<4x8xf32>, vector<8x8xf32> -> vector<8x8xf32>
    %30 = arith.addf %26, %29 : vector<8x8xf32>
    %c2 = arith.constant 2 : index
    %c0_12 = arith.constant 0 : index
    %c0_13 = arith.constant 0 : index
    %31 = vector.load %arg1[%c2, %c0_12, %c0_13] : memref<3x8x4xf32, #tpu.memory_space<vmem>>, vector<1x8x4xf32>
    %32 = vector.shape_cast %31 : vector<1x8x4xf32> to vector<8x4xf32>
    %cst_14 = arith.constant dense<0.000000e+00> : vector<8x8xf32>
    %33 = tpu.matmul %32, %23, %cst_14 {dimension_numbers = #tpu.dot_dimension_numbers<[1], [0], [0], [1], [0, 0, 1, 1], [], []>} : vector<8x4xf32>, vector<4x8xf32>, vector<8x8xf32> -> vector<8x8xf32>
    %34 = arith.addf %30, %33 : vector<8x8xf32>
    %c1_15 = arith.constant 1 : index
    %c0_16 = arith.constant 0 : index
    %c0_17 = arith.constant 0 : index
    %35 = vector.load %arg0[%c1_15, %c0_16, %c0_17] : memref<2x4x16xf32, #tpu.memory_space<vmem>>, vector<1x4x16xf32>
    %36 = vector.shape_cast %35 : vector<1x4x16xf32> to vector<4x16xf32>
    %cst_18 = arith.constant dense<0.000000e+00> : vector<4x8xf32>
    %37 = tpu.matmul %36, %6, %cst_18 {dimension_numbers = #tpu.dot_dimension_numbers<[1], [0], [0], [1], [0, 0, 1, 1], [], []>} : vector<4x16xf32>, vector<16x8xf32>, vector<4x8xf32> -> vector<4x8xf32>
    %cst_19 = arith.constant dense<0.000000e+00> : vector<4x8xf32>
    %38 = tpu.matmul %36, %13, %cst_19 {dimension_numbers = #tpu.dot_dimension_numbers<[1], [0], [0], [1], [0, 0, 1, 1], [], []>} : vector<4x16xf32>, vector<16x8xf32>, vector<4x8xf32> -> vector<4x8xf32>
    %39 = arith.maximumf %37, %38 : vector<4x8xf32>
    %cst_20 = arith.constant 0.000000e+00 : f32
    %40 = vector.broadcast %cst_20 : f32 to vector<4x1xf32>
    %41 = vector.extract_strided_slice %39 {offsets = [0, 0], sizes = [4, 7], strides = [1, 1]} : vector<4x8xf32> to vector<4x7xf32>
    %42 = tpu.concatenate %40, %41 in 1 : vector<4x1xf32>, vector<4x7xf32> -> vector<4x8xf32>
    %43 = vector.extract_strided_slice %39 {offsets = [0, 1], sizes = [4, 7], strides = [1, 1]} : vector<4x8xf32> to vector<4x7xf32>
    %44 = tpu.concatenate %43, %40 in 1 : vector<4x7xf32>, vector<4x1xf32> -> vector<4x8xf32>
    %c0_21 = arith.constant 0 : index
    %c0_22 = arith.constant 0 : index
    %c0_23 = arith.constant 0 : index
    %45 = vector.load %arg1[%c0_21, %c0_22, %c0_23] : memref<3x8x4xf32, #tpu.memory_space<vmem>>, vector<1x8x4xf32>
    %46 = vector.shape_cast %45 : vector<1x8x4xf32> to vector<8x4xf32>
    %cst_24 = arith.constant dense<0.000000e+00> : vector<8x8xf32>
    %47 = tpu.matmul %46, %42, %cst_24 {dimension_numbers = #tpu.dot_dimension_numbers<[1], [0], [0], [1], [0, 0, 1, 1], [], []>} : vector<8x4xf32>, vector<4x8xf32>, vector<8x8xf32> -> vector<8x8xf32>
    %c1_25 = arith.constant 1 : index
    %c0_26 = arith.constant 0 : index
    %c0_27 = arith.constant 0 : index
    %48 = vector.load %arg1[%c1_25, %c0_26, %c0_27] : memref<3x8x4xf32, #tpu.memory_space<vmem>>, vector<1x8x4xf32>
    %49 = vector.shape_cast %48 : vector<1x8x4xf32> to vector<8x4xf32>
    %cst_28 = arith.constant dense<0.000000e+00> : vector<8x8xf32>
    %50 = tpu.matmul %49, %39, %cst_28 {dimension_numbers = #tpu.dot_dimension_numbers<[1], [0], [0], [1], [0, 0, 1, 1], [], []>} : vector<8x4xf32>, vector<4x8xf32>, vector<8x8xf32> -> vector<8x8xf32>
    %51 = arith.addf %47, %50 : vector<8x8xf32>
    %c2_29 = arith.constant 2 : index
    %c0_30 = arith.constant 0 : index
    %c0_31 = arith.constant 0 : index
    %52 = vector.load %arg1[%c2_29, %c0_30, %c0_31] : memref<3x8x4xf32, #tpu.memory_space<vmem>>, vector<1x8x4xf32>
    %53 = vector.shape_cast %52 : vector<1x8x4xf32> to vector<8x4xf32>
    %cst_32 = arith.constant dense<0.000000e+00> : vector<8x8xf32>
    %54 = tpu.matmul %53, %44, %cst_32 {dimension_numbers = #tpu.dot_dimension_numbers<[1], [0], [0], [1], [0, 0, 1, 1], [], []>} : vector<8x4xf32>, vector<4x8xf32>, vector<8x8xf32> -> vector<8x8xf32>
    %55 = arith.addf %51, %54 : vector<8x8xf32>
    %cst_33 = arith.constant dense<0.000000e+00> : vector<8xf32>
    %56 = vector.multi_reduction <add>, %34, %cst_33 [1] : vector<8x8xf32> to vector<8xf32>
    %57 = vector.shape_cast %56 : vector<8xf32> to vector<8x1xf32>
    %cst_34 = arith.constant 0.000000e+00 : f32
    %58 = vector.broadcast %cst_34 : f32 to vector<8x1xf32>
    %59 = arith.addf %58, %57 : vector<8x1xf32>
    %cst_35 = arith.constant dense<0.000000e+00> : vector<8xf32>
    %60 = vector.multi_reduction <add>, %55, %cst_35 [1] : vector<8x8xf32> to vector<8xf32>
    %61 = vector.shape_cast %60 : vector<8xf32> to vector<8x1xf32>
    %62 = arith.addf %59, %61 : vector<8x1xf32>
    %cst_36 = arith.constant 1.600000e+01 : f32
    %63 = vector.broadcast %cst_36 : f32 to vector<8x1xf32>
    %64 = arith.divf %62, %63 : vector<8x1xf32>
    %65 = vector.broadcast %64 : vector<8x1xf32> to vector<8x8xf32>
    %66 = arith.subf %34, %65 : vector<8x8xf32>
    %67 = arith.mulf %66, %66 : vector<8x8xf32>
    %cst_37 = arith.constant dense<0.000000e+00> : vector<8xf32>
    %68 = vector.multi_reduction <add>, %67, %cst_37 [1] : vector<8x8xf32> to vector<8xf32>
    %69 = vector.shape_cast %68 : vector<8xf32> to vector<8x1xf32>
    %cst_38 = arith.constant 0.000000e+00 : f32
    %70 = vector.broadcast %cst_38 : f32 to vector<8x1xf32>
    %71 = arith.addf %70, %69 : vector<8x1xf32>
    %72 = vector.broadcast %64 : vector<8x1xf32> to vector<8x8xf32>
    %73 = arith.subf %55, %72 : vector<8x8xf32>
    %74 = arith.mulf %73, %73 : vector<8x8xf32>
    %cst_39 = arith.constant dense<0.000000e+00> : vector<8xf32>
    %75 = vector.multi_reduction <add>, %74, %cst_39 [1] : vector<8x8xf32> to vector<8xf32>
    %76 = vector.shape_cast %75 : vector<8xf32> to vector<8x1xf32>
    %77 = arith.addf %71, %76 : vector<8x1xf32>
    %cst_40 = arith.constant 1.600000e+01 : f32
    %78 = vector.broadcast %cst_40 : f32 to vector<8x1xf32>
    %79 = arith.divf %77, %78 : vector<8x1xf32>
    %c0_41 = arith.constant 0 : index
    %c0_42 = arith.constant 0 : index
    %80 = vector.load %arg3[%c0_41, %c0_42] : memref<8x1xf32, #tpu.memory_space<vmem>>, vector<8x1xf32>
    %cst_43 = arith.constant 9.99999974E-6 : f32
    %81 = vector.broadcast %cst_43 : f32 to vector<8x1xf32>
    %82 = arith.addf %79, %81 : vector<8x1xf32>
    %83 = math.rsqrt %82 : vector<8x1xf32>
    %84 = arith.mulf %80, %83 : vector<8x1xf32>
    %c0_44 = arith.constant 0 : index
    %c0_45 = arith.constant 0 : index
    %85 = vector.load %arg4[%c0_44, %c0_45] : memref<8x1xf32, #tpu.memory_space<vmem>>, vector<8x1xf32>
    %86 = arith.mulf %64, %84 : vector<8x1xf32>
    %87 = arith.subf %85, %86 : vector<8x1xf32>
    %88 = vector.broadcast %84 : vector<8x1xf32> to vector<8x8xf32>
    %89 = arith.mulf %34, %88 : vector<8x8xf32>
    %90 = vector.broadcast %87 : vector<8x1xf32> to vector<8x8xf32>
    %91 = arith.addf %89, %90 : vector<8x8xf32>
    %cst_46 = arith.constant 0.000000e+00 : f32
    %92 = vector.broadcast %cst_46 : f32 to vector<8x8xf32>
    %93 = arith.maximumf %91, %92 : vector<8x8xf32>
    %cst_47 = arith.constant 0.000000e+00 : f32
    %94 = vector.broadcast %cst_47 : f32 to vector<8x1xf32>
    %95 = vector.extract_strided_slice %93 {offsets = [0, 0], sizes = [8, 7], strides = [1, 1]} : vector<8x8xf32> to vector<8x7xf32>
    %96 = tpu.concatenate %94, %95 in 1 : vector<8x1xf32>, vector<8x7xf32> -> vector<8x8xf32>
    %97 = vector.extract_strided_slice %93 {offsets = [0, 1], sizes = [8, 7], strides = [1, 1]} : vector<8x8xf32> to vector<8x7xf32>
    %98 = tpu.concatenate %97, %94 in 1 : vector<8x7xf32>, vector<8x1xf32> -> vector<8x8xf32>
    %c0_48 = arith.constant 0 : index
    %c0_49 = arith.constant 0 : index
    %c0_50 = arith.constant 0 : index
    %99 = vector.load %arg2[%c0_48, %c0_49, %c0_50] : memref<3x8x8xf32, #tpu.memory_space<vmem>>, vector<1x8x8xf32>
    %100 = vector.shape_cast %99 : vector<1x8x8xf32> to vector<8x8xf32>
    %cst_51 = arith.constant dense<0.000000e+00> : vector<8x8xf32>
    %101 = tpu.matmul %100, %96, %cst_51 {dimension_numbers = #tpu.dot_dimension_numbers<[1], [0], [0], [1], [0, 0, 1, 1], [], []>} : vector<8x8xf32>, vector<8x8xf32>, vector<8x8xf32> -> vector<8x8xf32>
    %c1_52 = arith.constant 1 : index
    %c0_53 = arith.constant 0 : index
    %c0_54 = arith.constant 0 : index
    %102 = vector.load %arg2[%c1_52, %c0_53, %c0_54] : memref<3x8x8xf32, #tpu.memory_space<vmem>>, vector<1x8x8xf32>
    %103 = vector.shape_cast %102 : vector<1x8x8xf32> to vector<8x8xf32>
    %cst_55 = arith.constant dense<0.000000e+00> : vector<8x8xf32>
    %104 = tpu.matmul %103, %93, %cst_55 {dimension_numbers = #tpu.dot_dimension_numbers<[1], [0], [0], [1], [0, 0, 1, 1], [], []>} : vector<8x8xf32>, vector<8x8xf32>, vector<8x8xf32> -> vector<8x8xf32>
    %105 = arith.addf %101, %104 : vector<8x8xf32>
    %c2_56 = arith.constant 2 : index
    %c0_57 = arith.constant 0 : index
    %c0_58 = arith.constant 0 : index
    %106 = vector.load %arg2[%c2_56, %c0_57, %c0_58] : memref<3x8x8xf32, #tpu.memory_space<vmem>>, vector<1x8x8xf32>
    %107 = vector.shape_cast %106 : vector<1x8x8xf32> to vector<8x8xf32>
    %cst_59 = arith.constant dense<0.000000e+00> : vector<8x8xf32>
    %108 = tpu.matmul %107, %98, %cst_59 {dimension_numbers = #tpu.dot_dimension_numbers<[1], [0], [0], [1], [0, 0, 1, 1], [], []>} : vector<8x8xf32>, vector<8x8xf32>, vector<8x8xf32> -> vector<8x8xf32>
    %109 = arith.addf %105, %108 : vector<8x8xf32>
    %110 = vector.broadcast %84 : vector<8x1xf32> to vector<8x8xf32>
    %111 = arith.mulf %55, %110 : vector<8x8xf32>
    %112 = vector.broadcast %87 : vector<8x1xf32> to vector<8x8xf32>
    %113 = arith.addf %111, %112 : vector<8x8xf32>
    %cst_60 = arith.constant 0.000000e+00 : f32
    %114 = vector.broadcast %cst_60 : f32 to vector<8x8xf32>
    %115 = arith.maximumf %113, %114 : vector<8x8xf32>
    %cst_61 = arith.constant 0.000000e+00 : f32
    %116 = vector.broadcast %cst_61 : f32 to vector<8x1xf32>
    %117 = vector.extract_strided_slice %115 {offsets = [0, 0], sizes = [8, 7], strides = [1, 1]} : vector<8x8xf32> to vector<8x7xf32>
    %118 = tpu.concatenate %116, %117 in 1 : vector<8x1xf32>, vector<8x7xf32> -> vector<8x8xf32>
    %119 = vector.extract_strided_slice %115 {offsets = [0, 1], sizes = [8, 7], strides = [1, 1]} : vector<8x8xf32> to vector<8x7xf32>
    %120 = tpu.concatenate %119, %116 in 1 : vector<8x7xf32>, vector<8x1xf32> -> vector<8x8xf32>
    %c0_62 = arith.constant 0 : index
    %c0_63 = arith.constant 0 : index
    %c0_64 = arith.constant 0 : index
    %121 = vector.load %arg2[%c0_62, %c0_63, %c0_64] : memref<3x8x8xf32, #tpu.memory_space<vmem>>, vector<1x8x8xf32>
    %122 = vector.shape_cast %121 : vector<1x8x8xf32> to vector<8x8xf32>
    %cst_65 = arith.constant dense<0.000000e+00> : vector<8x8xf32>
    %123 = tpu.matmul %122, %118, %cst_65 {dimension_numbers = #tpu.dot_dimension_numbers<[1], [0], [0], [1], [0, 0, 1, 1], [], []>} : vector<8x8xf32>, vector<8x8xf32>, vector<8x8xf32> -> vector<8x8xf32>
    %c1_66 = arith.constant 1 : index
    %c0_67 = arith.constant 0 : index
    %c0_68 = arith.constant 0 : index
    %124 = vector.load %arg2[%c1_66, %c0_67, %c0_68] : memref<3x8x8xf32, #tpu.memory_space<vmem>>, vector<1x8x8xf32>
    %125 = vector.shape_cast %124 : vector<1x8x8xf32> to vector<8x8xf32>
    %cst_69 = arith.constant dense<0.000000e+00> : vector<8x8xf32>
    %126 = tpu.matmul %125, %115, %cst_69 {dimension_numbers = #tpu.dot_dimension_numbers<[1], [0], [0], [1], [0, 0, 1, 1], [], []>} : vector<8x8xf32>, vector<8x8xf32>, vector<8x8xf32> -> vector<8x8xf32>
    %127 = arith.addf %123, %126 : vector<8x8xf32>
    %c2_70 = arith.constant 2 : index
    %c0_71 = arith.constant 0 : index
    %c0_72 = arith.constant 0 : index
    %128 = vector.load %arg2[%c2_70, %c0_71, %c0_72] : memref<3x8x8xf32, #tpu.memory_space<vmem>>, vector<1x8x8xf32>
    %129 = vector.shape_cast %128 : vector<1x8x8xf32> to vector<8x8xf32>
    %cst_73 = arith.constant dense<0.000000e+00> : vector<8x8xf32>
    %130 = tpu.matmul %129, %120, %cst_73 {dimension_numbers = #tpu.dot_dimension_numbers<[1], [0], [0], [1], [0, 0, 1, 1], [], []>} : vector<8x8xf32>, vector<8x8xf32>, vector<8x8xf32> -> vector<8x8xf32>
    %131 = arith.addf %127, %130 : vector<8x8xf32>
    %cst_74 = arith.constant dense<0.000000e+00> : vector<8xf32>
    %132 = vector.multi_reduction <add>, %109, %cst_74 [1] : vector<8x8xf32> to vector<8xf32>
    %133 = vector.shape_cast %132 : vector<8xf32> to vector<8x1xf32>
    %cst_75 = arith.constant 0.000000e+00 : f32
    %134 = vector.broadcast %cst_75 : f32 to vector<8x1xf32>
    %135 = arith.addf %134, %133 : vector<8x1xf32>
    %cst_76 = arith.constant dense<0.000000e+00> : vector<8xf32>
    %136 = vector.multi_reduction <add>, %131, %cst_76 [1] : vector<8x8xf32> to vector<8xf32>
    %137 = vector.shape_cast %136 : vector<8xf32> to vector<8x1xf32>
    %138 = arith.addf %135, %137 : vector<8x1xf32>
    %cst_77 = arith.constant 1.600000e+01 : f32
    %139 = vector.broadcast %cst_77 : f32 to vector<8x1xf32>
    %140 = arith.divf %138, %139 : vector<8x1xf32>
    %141 = vector.broadcast %140 : vector<8x1xf32> to vector<8x8xf32>
    %142 = arith.subf %109, %141 : vector<8x8xf32>
    %143 = arith.mulf %142, %142 : vector<8x8xf32>
    %cst_78 = arith.constant dense<0.000000e+00> : vector<8xf32>
    %144 = vector.multi_reduction <add>, %143, %cst_78 [1] : vector<8x8xf32> to vector<8xf32>
    %145 = vector.shape_cast %144 : vector<8xf32> to vector<8x1xf32>
    %cst_79 = arith.constant 0.000000e+00 : f32
    %146 = vector.broadcast %cst_79 : f32 to vector<8x1xf32>
    %147 = arith.addf %146, %145 : vector<8x1xf32>
    %148 = vector.broadcast %140 : vector<8x1xf32> to vector<8x8xf32>
    %149 = arith.subf %131, %148 : vector<8x8xf32>
    %150 = arith.mulf %149, %149 : vector<8x8xf32>
    %cst_80 = arith.constant dense<0.000000e+00> : vector<8xf32>
    %151 = vector.multi_reduction <add>, %150, %cst_80 [1] : vector<8x8xf32> to vector<8xf32>
    %152 = vector.shape_cast %151 : vector<8xf32> to vector<8x1xf32>
    %153 = arith.addf %147, %152 : vector<8x1xf32>
    %cst_81 = arith.constant 1.600000e+01 : f32
    %154 = vector.broadcast %cst_81 : f32 to vector<8x1xf32>
    %155 = arith.divf %153, %154 : vector<8x1xf32>
    %c0_82 = arith.constant 0 : index
    %c0_83 = arith.constant 0 : index
    %156 = vector.load %arg5[%c0_82, %c0_83] : memref<8x1xf32, #tpu.memory_space<vmem>>, vector<8x1xf32>
    %cst_84 = arith.constant 9.99999974E-6 : f32
    %157 = vector.broadcast %cst_84 : f32 to vector<8x1xf32>
    %158 = arith.addf %155, %157 : vector<8x1xf32>
    %159 = math.rsqrt %158 : vector<8x1xf32>
    %160 = arith.mulf %156, %159 : vector<8x1xf32>
    %c0_85 = arith.constant 0 : index
    %c0_86 = arith.constant 0 : index
    %161 = vector.load %arg6[%c0_85, %c0_86] : memref<8x1xf32, #tpu.memory_space<vmem>>, vector<8x1xf32>
    %162 = arith.mulf %140, %160 : vector<8x1xf32>
    %163 = arith.subf %161, %162 : vector<8x1xf32>
    %164 = vector.broadcast %160 : vector<8x1xf32> to vector<8x8xf32>
    %165 = arith.mulf %109, %164 : vector<8x8xf32>
    %166 = vector.broadcast %163 : vector<8x1xf32> to vector<8x8xf32>
    %167 = arith.addf %165, %166 : vector<8x8xf32>
    %cst_87 = arith.constant 0.000000e+00 : f32
    %168 = vector.broadcast %cst_87 : f32 to vector<8x8xf32>
    %169 = arith.maximumf %167, %168 : vector<8x8xf32>
    %c0_88 = arith.constant 0 : index
    %c0_89 = arith.constant 0 : index
    %c0_90 = arith.constant 0 : index
    %170 = vector.load %arg7[%c0_88, %c0_89, %c0_90] : memref<2x8x8xf32, #tpu.memory_space<vmem>>, vector<1x8x8xf32>
    %171 = vector.shape_cast %170 : vector<1x8x8xf32> to vector<8x8xf32>
    %172 = vector.shape_cast %169 : vector<8x8xf32> to vector<1x8x8xf32>
    tpu.vector_store %arg7[%c0_88, %c0_89, %c0_90], %172 {strides = array<i32>} : memref<2x8x8xf32, #tpu.memory_space<vmem>>, vector<1x8x8xf32>,
    %173 = vector.broadcast %160 : vector<8x1xf32> to vector<8x8xf32>
    %174 = arith.mulf %131, %173 : vector<8x8xf32>
    %175 = vector.broadcast %163 : vector<8x1xf32> to vector<8x8xf32>
    %176 = arith.addf %174, %175 : vector<8x8xf32>
    %cst_91 = arith.constant 0.000000e+00 : f32
    %177 = vector.broadcast %cst_91 : f32 to vector<8x8xf32>
    %178 = arith.maximumf %176, %177 : vector<8x8xf32>
    %c1_92 = arith.constant 1 : index
    %c0_93 = arith.constant 0 : index
    %c0_94 = arith.constant 0 : index
    %179 = vector.load %arg7[%c1_92, %c0_93, %c0_94] : memref<2x8x8xf32, #tpu.memory_space<vmem>>, vector<1x8x8xf32>
    %180 = vector.shape_cast %179 : vector<1x8x8xf32> to vector<8x8xf32>
    %181 = vector.shape_cast %178 : vector<8x8xf32> to vector<1x8x8xf32>
    tpu.vector_store %arg7[%c1_92, %c0_93, %c0_94], %181 {strides = array<i32>} : memref<2x8x8xf32, #tpu.memory_space<vmem>>, vector<1x8x8xf32>,
    return
  }
}

</mosaic_0001>

<bundles_post_ra>
// kernel: down_block_1d.1
= control target key start
LH: loop header
LB: loop body
LE: loop exit
PB: predicated region body
PF: predicated region fallthrough
CT: control target
= control target key end

     0   :  { %v27_v0 = vlaneseq  ;;  %v1583_v1 = vmov 0.0   ;;  %s1800_s0 = inlined_call_operand.vmem [shape: f32[2,4,16], index: 0, kind: input, shape index: {}]   ;;  %s1801_s1 = inlined_call_operand.vmem [shape: f32[3,8,4], index: 1, kind: input, shape index: {}]   ;;  %s1802_s2 = inlined_call_operand.vmem [shape: f32[3,8,8], index: 2, kind: input, shape index: {}]   ;;  %s1803_s3 = inlined_call_operand.vmem [shape: f32[8,1], index: 3, kind: input, shape index: {}]   ;;  %s1804_s4 = inlined_call_operand.vmem [shape: f32[8,1], index: 4, kind: input, shape index: {}]   ;;  %s1805_s5 = inlined_call_operand.vmem [shape: f32[8,1], index: 5, kind: input, shape index: {}]   ;;  %s1806_s6 = inlined_call_operand.vmem [shape: f32[8,1], index: 6, kind: input, shape index: {}]   ;;  %s1807_s7 = inlined_call_operand.hbm [shape: f32[2,8,8], index: 7, kind: output, shape index: {}]  }
   0x1   :  { %1458 = vmatprep.subr.mxu0 %v1583_v1  ;;  %1465 = vmatprep.subr.mxu1 %v1583_v1 }
   0x2   :  { %12 = vsyncpa [#allocation3], 0  ;;  %v1634_v2 = vshrl.u32 %v27_v0, 7  ;;  %v31_v3 = vand.u32 127, %v27_v0  ;;  %vm1584_vm0 = vmmov 0   ;;  %v1585_v7 = vmov 1.0  }
   0x3   :  { %1462 = vmatprep.mubr.msk.f32.mxu0 %vm1584_vm0, %v1583_v1  ;;  %1469 = vmatprep.mubr.msk.f32.mxu1 %vm1584_vm0, %v1583_v1  ;;  %v46_v8 = vld [vmem:[%s1800_s0] sm:$0xf]  ;;  %vm47_vm3 = vcmask 130048   ;;  %vm210_vm6 = vcmask 1043456   ;;  %v1387_v13 = vld [vmem:[%s1801_s1 + $0x8] sm:$0xff]  ;;  %vm206_vm7 = vcmask 31744  }
   0x4   :  { %v29_v4 = vadd.s32 8, %v1634_v2  ;;  %v32_v5 = vmul.u32 2, %v31_v3  ;;  %s1586_s28 = smov 1   ;;  %s1587_s29 = smov 127   ;;  %vm196_vm8 = vcmask 7168   ;;  %v203_v16 = vld [vmem:[%s1801_s1] sm:$0xff] }
   0x5   :  { %vm201_vm9 = vcmask 56320   ;;  %v1392_v19 = vld [vmem:[%s1801_s1 + $0x10] sm:$0xff]  ;;  %v1395_v21 = vld [vmem:[%s1800_s0 + $0x4] sm:$0xf]  ;;  %vm812_vm10 = vcmask 64512   ;;  %v1588_v59 = vmov 0   ;;  %vm1755_vm11 = vmneg %vm196_vm8 }
   0x6   :  { %vm34_vm1 = vcmp.eq.s32.totalorder %v29_v4, %v32_v5  ;;  %vm33_vm2 = vcmp.eq.s32.totalorder %v1634_v2, %v32_v5  ;;  %v39_v6 = vadd.s32 1, %v32_v5  ;;  %1555 = vset.pattern.permute.xlu1 %v1588_v59  ;;  %1556 = vset.pattern.permute.xlu0 %v1588_v59  ;;  %v840_v5 = vld [vmem:[%s1804_s4] sm:$0xff]  ;;  %s1589_s22 = smov [#allocation2]  }
   0x7   :  { %1459 = vmatpush3.msk.msra.mxu0 %vm34_vm1, %v1585_v7  ;;  %v1339_v59 = vld [vmem:[%s1806_s6] sm:$0xff]  ;;  %s1366_s23 = sshll.u32 %s1589_s22, 4  ;;  %s1367_s23 = int_to_ptr.vmem [resolvable:$true] %s1366_s23 }
   0x8   :  { %1460 = vmatprep.subr.mxu0 %v1583_v1  ;;  %vm41_vm4 = vcmp.eq.s32.totalorder %v29_v4, %v39_v6  ;;  %vm40_vm5 = vcmp.eq.s32.totalorder %v1634_v2, %v39_v6  ;;  %v836_v2 = vld [vmem:[%s1803_s3] sm:$0xff]  ;;  %p1566_p1 = scmp.lt.s32.totalorder %s1367_s23, %s1367_s23 }
   0x9   :  { %1461 = vmatpush3.msk.msra.mxu0 %vm33_vm2, %v1585_v7  ;;  %1466 = vmatpush3.msk.msra.mxu1 %vm41_vm4, %v1585_v7 }
   0xa   :  { %1463 = vmatmul.mubr.msk.f32.vlgmr.msra.gmra.mxu0 %vm47_vm3, %v46_v8  ;;  %1467 = vmatprep.subr.mxu1 %v1583_v1 }
   0xb   :  { %1468 = vmatpush3.msk.msra.mxu1 %vm40_vm5, %v1585_v7  ;;  %1472 = vmatprep.subr.mxu0 %v1583_v1 }
   0xc   :  { %1470 = vmatmul.mubr.msk.f32.vlgmr.msra.gmra.mxu1 %vm47_vm3, %v46_v8  ;;  %1474 = vmatprep.mubr.msk.f32.mxu0 %vm1584_vm0, %v1583_v1 }
   0xd   :  { %1477 = vmatprep.subr.mxu1 %v1583_v1  ;;  %1479 = vmatprep.mubr.msk.f32.mxu1 %vm1584_vm0, %v1583_v1 }
  0xca   :  { %v117_v9 = vpop.f32.mrf.mxu0 }
  0xcc   :  { %v1464_v10 = vpop.f32.mrf.mxu0  ;;  %v187_v11 = vpop.f32.mrf.mxu1 }
  0xcd   :  { %v191_v12 = vmax.f32 %v117_v9, %v187_v11 }
  0xce   :  { %v1471_v14 = vpop.f32.mrf.mxu1 }
  0xcf   :  { %193 = vrot.lane.b32.xlu0 %v191_v12, %s1586_s28  ;;  %1473 = vmatpush3.msk.msra.mxu0 %vm210_vm6, %v191_v12 }
  0xd0   :  { %1475 = vmatmul.mubr.msk.f32.vlgmr.msra.gmra.mxu0 %vm206_vm7, %v1387_v13  ;;  %1482 = vmatprep.subr.mxu0 %v1583_v1 }
  0xd1   :  { %1484 = vmatprep.mubr.msk.f32.mxu0 %vm1584_vm0, %v1583_v1 }
  0xd3   :  { %198 = vrot.lane.b32.xlu0 %v191_v12, %s1587_s29 }
 0x141   :  { %v194_v15 = vpop.permute.xlu0 %193 }
 0x142   :  { %v197_v17 = vsel %vm196_vm8, 0.0, %v194_v15 }
 0x143   :  { %1478 = vmatpush3.msk.msra.mxu1 %vm210_vm6, %v197_v17 }
 0x144   :  { %1480 = vmatmul.mubr.msk.f32.vlgmr.msra.gmra.mxu1 %vm206_vm7, %v203_v16  ;;  %1487 = vmatprep.subr.mxu1 %v1583_v1 }
 0x145   :  { %v199_v18 = vpop.permute.xlu0 %198  ;;  %1488 = vmatpush3.msk.msra.mxu1 %vm34_vm1, %v1585_v7  ;;  %1491 = vmatprep.mubr.msk.f32.mxu1 %vm1584_vm0, %v1583_v1 }
 0x146   :  { %v202_v20 = vsel %vm201_vm9, %v199_v18, 0.0  ;;  %1489 = vmatprep.subr.mxu1 %v1583_v1  ;;  %v865_v18 = vld [vmem:[%s1802_s2] sm:$0xff] }
 0x147   :  { %1483 = vmatpush3.msk.msra.mxu0 %vm210_vm6, %v202_v20  ;;  %1490 = vmatpush3.msk.msra.mxu1 %vm33_vm2, %v1585_v7  ;;  %v1413_v20 = vld [vmem:[%s1802_s2 + $0x10] sm:$0xff] }
 0x148   :  { %1485 = vmatmul.mubr.msk.f32.vlgmr.msra.gmra.mxu0 %vm206_vm7, %v1392_v19  ;;  %1494 = vmatprep.subr.mxu0 %v1583_v1 }
 0x149   :  { %1495 = vmatpush3.msk.msra.mxu0 %vm41_vm4, %v1585_v7  ;;  %1492 = vmatmul.mubr.msk.f32.vlgmr.msra.gmra.mxu1 %vm47_vm3, %v1395_v21 }
 0x14a   :  { %1496 = vmatprep.subr.mxu0 %v1583_v1  ;;  %1498 = vmatprep.mubr.msk.f32.mxu0 %vm1584_vm0, %v1583_v1 }
 0x14b   :  { %1497 = vmatpush3.msk.msra.mxu0 %vm40_vm5, %v1585_v7  ;;  %1501 = vmatprep.subr.mxu1 %v1583_v1 }
 0x14c   :  { %1499 = vmatmul.mubr.msk.f32.vlgmr.msra.gmra.mxu0 %vm47_vm3, %v1395_v21  ;;  %1503 = vmatprep.mubr.msk.f32.mxu1 %vm1584_vm0, %v1583_v1 }
 0x14d   :  { %1506 = vmatprep.subr.mxu0 %v1583_v1  ;;  %1508 = vmatprep.mubr.msk.f32.mxu0 %vm1584_vm0, %v1583_v1 }
 0x190   :  { %v279_v22 = vpop.f32.mrf.mxu0 }
 0x192   :  { %v1476_v23 = vpop.f32.mrf.mxu0 }
 0x204   :  { %v355_v24 = vpop.f32.mrf.mxu1 }
 0x205   :  { %v356_v26 = vadd.f32 %v355_v24, %v279_v22 }
 0x206   :  { %v1481_v25 = vpop.f32.mrf.mxu1 }
 0x208   :  { %v433_v27 = vpop.f32.mrf.mxu0 }
 0x209   :  { %v1709_v28 = vadd.f32 %v433_v27, %v356_v26  ;;  %v509_v29 = vpop.f32.mrf.mxu1 }
 0x20a   :  { %v1486_v30 = vpop.f32.mrf.mxu0 }
 0x20b   :  { %v1493_v31 = vpop.f32.mrf.mxu1  ;;  %v813_v32 = vsel %vm812_vm10, %v1709_v28, 0.0 }
 0x20c   :  { %814 = vadd.xlane.f32.xlu0 %v813_v32  ;;  %v579_v33 = vpop.f32.mrf.mxu0 }
 0x20d   :  { %v583_v34 = vmax.f32 %v509_v29, %v579_v33 }
 0x20e   :  { %v1500_v35 = vpop.f32.mrf.mxu0 }
 0x20f   :  { %585 = vrot.lane.b32.xlu1 %v583_v34, %s1586_s28  ;;  %1502 = vmatpush3.msk.msra.mxu1 %vm210_vm6, %v583_v34 }
 0x210   :  { %1504 = vmatmul.mubr.msk.f32.vlgmr.msra.gmra.mxu1 %vm206_vm7, %v1387_v13  ;;  %1511 = vmatprep.subr.mxu1 %v1583_v1  ;;  %v1408_v13 = vld [vmem:[%s1802_s2 + $0x8] sm:$0xff] }
 0x211   :  { %1513 = vmatprep.mubr.msk.f32.mxu1 %vm1584_vm0, %v1583_v1 }
 0x213   :  { %589 = vrot.lane.b32.xlu1 %v583_v34, %s1587_s29 }
 0x281   :  { %v586_v36 = vpop.permute.xlu1 %585 }
 0x282   :  { %v588_v37 = vsel %vm196_vm8, 0.0, %v586_v36 }
 0x283   :  { %1507 = vmatpush3.msk.msra.mxu0 %vm210_vm6, %v588_v37 }
 0x284   :  { %1509 = vmatmul.mubr.msk.f32.vlgmr.msra.gmra.mxu0 %vm206_vm7, %v203_v16  ;;  %1516 = vmatprep.subr.mxu0 %v1583_v1 }
 0x285   :  { %v590_v38 = vpop.permute.xlu1 %589  ;;  %1518 = vmatprep.mubr.msk.f32.mxu0 %vm1584_vm0, %v1583_v1 }
 0x286   :  { %v592_v39 = vsel %vm201_vm9, %v590_v38, 0.0 }
 0x287   :  { %1512 = vmatpush3.msk.msra.mxu1 %vm210_vm6, %v592_v39 }
 0x288   :  { %1514 = vmatmul.mubr.msk.f32.vlgmr.msra.gmra.mxu1 %vm206_vm7, %v1392_v19  ;;  %1521 = vmatprep.subr.mxu1 %v1583_v1 }
 0x289   :  { %1523 = vmatprep.mubr.msk.f32.mxu1 %vm1584_vm0, %v1583_v1 }
 0x295   :  { %v815_v49 = vpop.xlane.xlu0 %814 }
 0x2d0   :  { %v661_v40 = vpop.f32.mrf.mxu1 }
 0x2d2   :  { %v1505_v41 = vpop.f32.mrf.mxu1 }
 0x344   :  { %v734_v42 = vpop.f32.mrf.mxu0 }
 0x345   :  { %v735_v44 = vadd.f32 %v734_v42, %v661_v40 }
 0x346   :  { %v1510_v43 = vpop.f32.mrf.mxu0 }
 0x348   :  { %v807_v45 = vpop.f32.mrf.mxu1 }
 0x349   :  { %v811_v46 = vadd.f32 %v807_v45, %v735_v44 }
 0x34a   :  { %v1515_v47 = vpop.f32.mrf.mxu1 }
 0x34b   :  { %v817_v48 = vsel %vm812_vm10, %v811_v46, 0.0 }
 0x34c   :  { %818 = vadd.xlane.f32.xlu1 %v817_v48 }
 0x3d5   :  { %v819_v50 = vpop.xlane.xlu1 %818 }
 0x3d6   :  { %v820_v51 = vadd.f32 %v819_v50, %v815_v49 }
 0x3d8   :  { %v822_v52 = vmul.f32 0.0625, %v820_v51 }
 0x3da   :  { %v823_v53 = vsub.f32 %v1709_v28, %v822_v52  ;;  %v829_v54 = vsub.f32 %v811_v46, %v822_v52 }
 0x3dc   :  { %v824_v55 = vmul.f32 %v823_v53, %v823_v53  ;;  %v830_v57 = vmul.f32 %v829_v54, %v829_v54 }
 0x3de   :  { %v825_v56 = vsel %vm812_vm10, %v824_v55, 0.0  ;;  %v831_v58 = vsel %vm812_vm10, %v830_v57, 0.0 }
 0x3df   :  { %826 = vadd.xlane.f32.xlu0 %v825_v56  ;;  %v1335_v56 = vld [vmem:[%s1805_s5] sm:$0xff]  ;;  %s1561_s5 = scalar_lea.vmem %s1367_s23, 256 }
 0x3e0   :  { %p1562_p0 = scmp.ne.s32.totalorder %s1367_s23, %s1561_s5  ;;  %p1567_p2 = scmp.lt.s32.totalorder %s1561_s5, %s1561_s5 }
 0x3e2   :  { %p1568_p3 = por %p1567_p2, %p1566_p1 }
 0x3e3   :  { %832 = vadd.xlane.f32.xlu0 %v831_v58 }
 0x3e4   :  { %p1569_p4 = pnand %p1568_p3, %p1562_p0 }
 0x468   :  { %v827_v60 = vpop.xlane.xlu0 %826 }
 0x46c   :  { %v833_v61 = vpop.xlane.xlu0 %832 }
 0x46d   :  { %v834_v62 = vadd.f32 %v833_v61, %v827_v60 }
 0x46f   :  { %v835_v63 = vmul.f32 0.0625, %v834_v62 }
 0x471   :  { %v837_v0 = vadd.f32 1e-05, %v835_v63 }
 0x473   :  { %1557 = vrsqrt.f32 %v837_v0 }
 0x480   :  { %v1558_v3 = vpop.eup %1557 }
 0x481   :  { %v839_v4 = vmul.f32 %v1558_v3, %v836_v2 }
 0x483   :  { %845 = vperm.xlu1 %1555, %v839_v4   ;;  %v841_v6 = vmul.f32 %v839_v4, %v822_v52 }
 0x485   :  { %v842_v7 = vsub.f32 %v840_v5, %v841_v6 }
 0x487   :  { %851 = vperm.xlu0 %1556, %v842_v7  }
 0x4fe   :  { %v846_v8 = vpop.permute.xlu1 %845 }
 0x4ff   :  { %v848_v9 = vmul.f32 %v846_v8, %v1709_v28  ;;  %v1090_v14 = vmul.f32 %v846_v8, %v811_v46 }
 0x502   :  { %v852_v10 = vpop.permute.xlu0 %851 }
 0x503   :  { %v854_v11 = vadd.f32 %v852_v10, %v848_v9  ;;  %v1091_v15 = vadd.f32 %v1090_v14, %v852_v10 }
 0x505   :  { %v855_v12 = vmax.f32 %v854_v11, 0.0  ;;  %v1092_v16 = vmax.f32 %v1091_v15, 0.0 }
 0x507   :  { %857 = vrot.lane.b32.xlu1 %v855_v12, %s1586_s28  ;;  %1517 = vmatpush3.msra.mxu0 %v855_v12 }
 0x508   :  { %1519 = vmatmul.mubr.msk.f32.vlgmr.msra.gmra.mxu0 %vm812_vm10, %v1408_v13  ;;  %1526 = vmatprep.subr.mxu0 %v1583_v1 }
 0x509   :  { %1528 = vmatprep.mubr.msk.f32.mxu0 %vm1584_vm0, %v1583_v1 }
 0x50b   :  { %861 = vrot.lane.b32.xlu1 %v855_v12, %s1587_s29 }
 0x50f   :  { %1094 = vrot.lane.b32.xlu1 %v1092_v16, %s1586_s28 }
 0x513   :  { %1098 = vrot.lane.b32.xlu1 %v1092_v16, %s1587_s29 }
 0x579   :  { %v858_v19 = vpop.permute.xlu1 %857 }
 0x57a   :  { %1522 = vmatpush3.msk.msra.mxu1 %vm1755_vm11, %v858_v19 }
 0x57b   :  { %1531 = vmatprep.subr.mxu1 %v1583_v1  ;;  %1524 = vmatmul.mubr.msk.f32.vlgmr.msra.gmra.mxu1 %vm812_vm10, %v865_v18 }
 0x57c   :  { %1532 = vmatpush3.msra.mxu1 %v1092_v16  ;;  %1533 = vmatprep.mubr.msk.f32.mxu1 %vm1584_vm0, %v1583_v1 }
 0x57d   :  { %v862_v21 = vpop.permute.xlu1 %861  ;;  %1541 = vmatprep.subr.mxu1 %v1583_v1 }
 0x57e   :  { %1527 = vmatpush3.msk.msra.mxu0 %vm201_vm9, %v862_v21 }
 0x57f   :  { %1529 = vmatmul.mubr.msk.f32.vlgmr.msra.gmra.mxu0 %vm812_vm10, %v1413_v20  ;;  %1536 = vmatprep.subr.mxu0 %v1583_v1 }
 0x580   :  { %1534 = vmatmul.mubr.msk.f32.vlgmr.msra.gmra.mxu1 %vm812_vm10, %v1408_v13  ;;  %1538 = vmatprep.mubr.msk.f32.mxu0 %vm1584_vm0, %v1583_v1 }
 0x581   :  { %v1095_v22 = vpop.permute.xlu1 %1094  ;;  %1543 = vmatprep.mubr.msk.f32.mxu1 %vm1584_vm0, %v1583_v1 }
 0x582   :  { %1537 = vmatpush3.msk.msra.mxu0 %vm1755_vm11, %v1095_v22 }
 0x583   :  { %1539 = vmatmul.mubr.msk.f32.vlgmr.msra.gmra.mxu0 %vm812_vm10, %v865_v18 }
 0x585   :  { %v1099_v23 = vpop.permute.xlu1 %1098 }
 0x586   :  { %1542 = vmatpush3.msk.msra.mxu1 %vm201_vm9, %v1099_v23 }
 0x587   :  { %1544 = vmatmul.mubr.msk.f32.vlgmr.msra.gmra.mxu1 %vm812_vm10, %v1413_v20 }
 0x5c8   :  { %v937_v24 = vpop.f32.mrf.mxu0 }
 0x5ca   :  { %v1520_v25 = vpop.f32.mrf.mxu0 }
 0x63b   :  { %v1010_v26 = vpop.f32.mrf.mxu1 }
 0x63c   :  { %v1011_v27 = vadd.f32 %v1010_v26, %v937_v24 }
 0x63d   :  { %v1525_v28 = vpop.f32.mrf.mxu1 }
 0x63f   :  { %v1085_v29 = vpop.f32.mrf.mxu0 }
 0x640   :  { %v1089_v30 = vadd.f32 %v1085_v29, %v1011_v27  ;;  %v1168_v31 = vpop.f32.mrf.mxu1 }
 0x641   :  { %v1530_v32 = vpop.f32.mrf.mxu0 }
 0x642   :  { %v1535_v1 = vpop.f32.mrf.mxu1  ;;  %v1313_v33 = vsel %vm812_vm10, %v1089_v30, 0.0 }
 0x643   :  { %v1238_v34 = vpop.f32.mrf.mxu0  ;;  %1314 = vadd.xlane.f32.xlu1 %v1313_v33 }
 0x644   :  { %v1239_v36 = vadd.f32 %v1238_v34, %v1168_v31 }
 0x645   :  { %v1540_v35 = vpop.f32.mrf.mxu0 }
 0x647   :  { %v1308_v37 = vpop.f32.mrf.mxu1 }
 0x648   :  { %v1312_v38 = vadd.f32 %v1308_v37, %v1239_v36 }
 0x649   :  { %v1545_v39 = vpop.f32.mrf.mxu1 }
 0x64a   :  { %v1317_v40 = vsel %vm812_vm10, %v1312_v38, 0.0 }
 0x64b   :  { %1318 = vadd.xlane.f32.xlu0 %v1317_v40 }
 0x6cc   :  { %v1315_v41 = vpop.xlane.xlu1 %1314 }
 0x6d4   :  { %v1319_v42 = vpop.xlane.xlu0 %1318 }
 0x6d5   :  { %v1320_v43 = vadd.f32 %v1319_v42, %v1315_v41 }
 0x6d7   :  { %v1321_v44 = vmul.f32 0.0625, %v1320_v43 }
 0x6d9   :  { %v1322_v45 = vsub.f32 %v1089_v30, %v1321_v44  ;;  %v1328_v46 = vsub.f32 %v1312_v38, %v1321_v44 }
 0x6db   :  { %v1323_v47 = vmul.f32 %v1322_v45, %v1322_v45  ;;  %v1329_v49 = vmul.f32 %v1328_v46, %v1328_v46 }
 0x6dd   :  { %v1324_v48 = vsel %vm812_vm10, %v1323_v47, 0.0  ;;  %v1330_v50 = vsel %vm812_vm10, %v1329_v49, 0.0 }
 0x6de   :  { %1325 = vadd.xlane.f32.xlu1 %v1324_v48 }
 0x6e2   :  { %1331 = vadd.xlane.f32.xlu1 %v1330_v50 }
 0x767   :  { %v1326_v51 = vpop.xlane.xlu1 %1325 }
 0x76b   :  { %v1332_v52 = vpop.xlane.xlu1 %1331 }
 0x76c   :  { %v1333_v53 = vadd.f32 %v1332_v52, %v1326_v51 }
 0x76e   :  { %v1334_v54 = vmul.f32 0.0625, %v1333_v53 }
 0x770   :  { %v1336_v55 = vadd.f32 1e-05, %v1334_v54 }
 0x772   :  { %1559 = vrsqrt.f32 %v1336_v55 }
 0x77f   :  { %v1560_v57 = vpop.eup %1559 }
 0x780   :  { %v1338_v58 = vmul.f32 %v1560_v57, %v1335_v56 }
 0x782   :  { %1344 = vperm.xlu1 %1555, %v1338_v58   ;;  %v1340_v60 = vmul.f32 %v1338_v58, %v1321_v44 }
 0x784   :  { %v1341_v61 = vsub.f32 %v1339_v59, %v1340_v60 }
 0x786   :  { %1350 = vperm.xlu0 %1556, %v1341_v61  }
 0x7fd   :  { %v1345_v62 = vpop.permute.xlu1 %1344 }
 0x7fe   :  { %v1347_v63 = vmul.f32 %v1345_v62, %v1089_v30  ;;  %v1356_v0 = vmul.f32 %v1345_v62, %v1312_v38 }
 0x801   :  { %v1351_v2 = vpop.permute.xlu0 %1350 }
 0x802   :  { %v1353_v3 = vadd.f32 %v1351_v2, %v1347_v63  ;;  %v1357_v4 = vadd.f32 %v1356_v0, %v1351_v2 }
 0x804   :  { %v1354_v5 = vmax.f32 %v1353_v3, 0.0  ;;  %v1358_v6 = vmax.f32 %v1357_v4, 0.0 }
 0x806   :  { %1355 = vst.msk [vmem:[#allocation2] sm:$0xff] %vm812_vm10, %v1354_v5  ;;  %1360 = vst.msk [vmem:[#allocation2 + $0x8] sm:$0xff] %vm812_vm10, %v1358_v6 }
 0x807   :  { %1572 = shalt.err (!%p1569_p4)
}
 0x808   :  { %s1590_s6 = smov 128   ;;  %s1591_s24 = smov 8  }
 0x809   :  { %1372 = dma.vmem_to_hbm [thread:$0]  %s1367_s23, 256, %s1807_s7, [#allocation3], %s1590_s6, %s1590_s6, %s1591_s24  }
 0x80a   :  { %1581 = dma.done.wait [#allocation3], 256  }
 0x80b   :  { %1582 = vsyncadd [#allocation3], 4294967040 }
 0x80c   :  { %1376 = vsyncpa [#allocation3], 1 }

</bundles_post_ra>
